<compile_context>
chip_gen: v7x
topology: tpu7x:2x2x1
jax: 0.10.0
libtpu: 0.0.40
codegen_flags: <defaults>
</compile_context>

<pallas_src>
import numpy as np
import jax
import jax.numpy as jnp
from jax import lax
from jax.experimental import pallas as pl
from jax.experimental.pallas import tpu as pltpu

# ---- configuration (mirrors args / data of the PyTorch Model) ----
B = 2           # batch
P = 16          # args.window
M = 8           # data.m
HIDC = 16       # args.hidCNN
CK = 5          # args.CNN_kernel
H_CONV = P - (CK - 1)                   # 12  (height_after_conv)
# NOTE: the PyTorch module derives the deconv kernel height from
# height_after_pooling = H_CONV / 2 = 6, even though the *actual* pooled height
# after MaxPool2d(kernel=1, stride=4) is 3.  This mirrors the module's own
# quirk on purpose -- do not "fix" it.
H_POOL_MODULE = H_CONV // 2             # 6
DH = P - H_POOL_MODULE + 1              # 11  (ConvTranspose2d kernel height)
POOL_IDX = tuple(range(0, H_CONV, 4))   # MaxPool2d(1, 4): rows 0, 4, 8
H_POOL = len(POOL_IDX)                  # 3   (actual pooled height)
H_OUT = (H_POOL - 1) + DH               # 13  (ConvTranspose2d output height)
R_LAST = POOL_IDX[-1]                   # 8   (conv row feeding the returned output row)


def aenet_kernel(x_ref, wenc_ref, benc_ref, wdec_ref, bdec_ref, out_ref):
    # ---- encode: only conv row R_LAST survives the algebraic collapse ----
    #   conv[b, c] = sum_{k, m} x[b, R_LAST + k, m] * w_enc[c, k, m]
    # Expressed as CK tiny MXU contractions over the lane (m) axis: static ref
    # slices are free, no reshape/relayout of x is emitted, and the encode
    # weight is consumed untransposed (rhs contracting dim = 1).
    dn_lastdim = (((1,), (1,)), ((), ()))        # contract dim 1 of both operands
    conv = lax.dot_general(x_ref[:, R_LAST, :], wenc_ref[:, 0, :], dn_lastdim,
                           preferred_element_type=jnp.float32)
    for k in range(1, CK):                       # unrolled at trace time (CK = 5)
        conv = conv + lax.dot_general(x_ref[:, R_LAST + k, :], wenc_ref[:, k, :],
                                      dn_lastdim,
                                      preferred_element_type=jnp.float32)
    conv = jnp.maximum(conv + benc_ref[...], 0.0)                # (B, hidC)

    # ---- decode: only the kh = Dh-1 tap reaches the returned output row ----
    out = jnp.dot(conv, wdec_ref[...],
                  preferred_element_type=jnp.float32)            # (B, m)
    out_ref[...] = jnp.maximum(out + bdec_ref[...], 0.0)         # one (B, m) store


def prepare_params(w_enc, b_enc, w_dec, b_dec):
    """One-time weight preprocessing (hoisted out of the per-call path).

    w_enc: (hidC, 1, Ck, m)   b_enc: (hidC,)
    w_dec: (hidC, 1, Dh, m)   b_dec: (1,)
    """
    w_enc_p = w_enc[:, 0, :, :]                                   # (hidC, Ck, m)
    b_enc_p = b_enc.reshape(1, HIDC).astype(jnp.float32)          # (1, hidC)
    w_dec_p = w_dec[:, 0, DH - 1, :]                              # (hidC, m)
    b_dec_p = jnp.broadcast_to(b_dec.reshape(1, 1).astype(jnp.float32),
                               (1, M))                            # (1, m) VMEM bias
    return (jnp.asarray(w_enc_p, jnp.float32), b_enc_p,
            jnp.asarray(w_dec_p, jnp.float32), jnp.asarray(b_dec_p))


def aenet_forward(x, params):
    """x: (batch, P, m) float32, params from prepare_params() -> (batch, m)."""
    w_enc_p, b_enc_p, w_dec_p, b_dec_p = params
    batch = x.shape[0]

    flops = 2 * batch * (CK * M * HIDC + HIDC * M)
    bytes_accessed = 4 * (x.size + w_enc_p.size + b_enc_p.size
                          + w_dec_p.size + b_dec_p.size + batch * M)

    vmem = pl.BlockSpec(memory_space=pltpu.MemorySpace.VMEM)
    return pl.pallas_call(
        aenet_kernel,
        out_shape=jax.ShapeDtypeStruct((batch, M), jnp.float32),
        in_specs=[vmem, vmem, vmem, vmem, vmem],
        out_specs=vmem,
        cost_estimate=pl.CostEstimate(flops=flops, transcendentals=0,
                                      bytes_accessed=bytes_accessed),
    )(x, w_enc_p, b_enc_p, w_dec_p, b_dec_p)


def reference_forward(x, w_enc, b_enc, w_dec, b_dec):
    """Plain-JAX reference implementing the full PyTorch op sequence directly."""
    batch = x.shape[0]
    windows = jnp.stack([x[:, h:h + CK, :] for h in range(H_CONV)], axis=1)  # (B,Hc,Ck,m)
    conv = jnp.einsum('bhkj,ckj->bch', windows, w_enc[:, 0]) + b_enc[None, :, None]
    conv = jnp.maximum(conv, 0.0)                  # (B, hidC, H_conv)
    pooled = conv[:, :, ::4]                       # MaxPool2d(1, 4): (B, hidC, H_pool)
    out = jnp.zeros((batch, H_OUT, M), jnp.float32) + b_dec[0]
    for ih in range(H_POOL):
        for kh in range(DH):
            out = out.at[:, ih + kh, :].add(
                jnp.einsum('bc,cw->bw', pooled[:, :, ih], w_dec[:, 0, kh, :]))
    out = jnp.maximum(out, 0.0)
    return out[:, -1, :]


if __name__ == "__main__":
    key = jax.random.PRNGKey(0)
    kx, k1, k2, k3, k4 = jax.random.split(key, 5)
    x = jax.random.normal(kx, (B, P, M), dtype=jnp.float32)
    # Deterministic synthetic parameters (shapes follow nn.Conv2d / nn.ConvTranspose2d)
    w_enc = 0.1 * jax.random.normal(k1, (HIDC, 1, CK, M), dtype=jnp.float32)
    b_enc = 0.1 * jax.random.normal(k2, (HIDC,), dtype=jnp.float32)
    w_dec = 0.1 * jax.random.normal(k3, (HIDC, 1, DH, M), dtype=jnp.float32)
    b_dec = 0.1 * jax.random.normal(k4, (1,), dtype=jnp.float32)

    # One-time parameter preparation (not part of the per-call path).
    params = prepare_params(w_enc, b_enc, w_dec, b_dec)
    params = jax.tree_util.tree_map(jax.block_until_ready, params)

    out = aenet_forward(x, params)
    out = jax.block_until_ready(out)

    ref = reference_forward(x, w_enc, b_enc, w_dec, b_dec)
    np.testing.assert_allclose(np.asarray(out), np.asarray(ref), rtol=1e-4, atol=1e-4)
    print("KERNEL_OK")
</pallas_src>

<mosaic_0001>
module attributes {stable_mosaic.version = 11 : i64} {
  func.func @aenet_kernel(%arg0: memref<2x16x8xf32, #tpu.memory_space<vmem>>, %arg1: memref<16x5x8xf32, #tpu.memory_space<vmem>>, %arg2: memref<1x16xf32, #tpu.memory_space<vmem>>, %arg3: memref<16x8xf32, #tpu.memory_space<vmem>>, %arg4: memref<1x8xf32, #tpu.memory_space<vmem>>, %arg5: memref<2x8xf32, #tpu.memory_space<vmem>>) attributes {dimension_semantics = [], scalar_prefetch = 0 : i64, scratch_operands = 0 : i64, tpu.core_type = #tpu.core_type<tc>} {
    %c0 = arith.constant 0 : index
    %c8 = arith.constant 8 : index
    %c0_0 = arith.constant 0 : index
    %0 = vector.load %arg0[%c0, %c8, %c0_0] : memref<2x16x8xf32, #tpu.memory_space<vmem>>, vector<2x1x8xf32>
    %1 = vector.shape_cast %0 : vector<2x1x8xf32> to vector<2x8xf32>
    %c0_1 = arith.constant 0 : index
    %c0_2 = arith.constant 0 : index
    %c0_3 = arith.constant 0 : index
    %2 = vector.load %arg1[%c0_1, %c0_2, %c0_3] : memref<16x5x8xf32, #tpu.memory_space<vmem>>, vector<16x1x8xf32>
    %3 = vector.shape_cast %2 : vector<16x1x8xf32> to vector<16x8xf32>
    %cst = arith.constant dense<0.000000e+00> : vector<2x16xf32>
    %4 = tpu.matmul %1, %3, %cst {dimension_numbers = #tpu.dot_dimension_numbers<[1], [1], [0], [0], [0, 0, 1, 0], [], []>} : vector<2x8xf32>, vector<16x8xf32>, vector<2x16xf32> -> vector<2x16xf32>
    %c0_4 = arith.constant 0 : index
    %c9 = arith.constant 9 : index
    %c0_5 = arith.constant 0 : index
    %5 = vector.load %arg0[%c0_4, %c9, %c0_5] : memref<2x16x8xf32, #tpu.memory_space<vmem>>, vector<2x1x8xf32>
    %6 = vector.shape_cast %5 : vector<2x1x8xf32> to vector<2x8xf32>
    %c0_6 = arith.constant 0 : index
    %c1 = arith.constant 1 : index
    %c0_7 = arith.constant 0 : index
    %7 = vector.load %arg1[%c0_6, %c1, %c0_7] : memref<16x5x8xf32, #tpu.memory_space<vmem>>, vector<16x1x8xf32>
    %8 = vector.shape_cast %7 : vector<16x1x8xf32> to vector<16x8xf32>
    %cst_8 = arith.constant dense<0.000000e+00> : vector<2x16xf32>
    %9 = tpu.matmul %6, %8, %cst_8 {dimension_numbers = #tpu.dot_dimension_numbers<[1], [1], [0], [0], [0, 0, 1, 0], [], []>} : vector<2x8xf32>, vector<16x8xf32>, vector<2x16xf32> -> vector<2x16xf32>
    %10 = arith.addf %4, %9 : vector<2x16xf32>
    %c0_9 = arith.constant 0 : index
    %c10 = arith.constant 10 : index
    %c0_10 = arith.constant 0 : index
    %11 = vector.load %arg0[%c0_9, %c10, %c0_10] : memref<2x16x8xf32, #tpu.memory_space<vmem>>, vector<2x1x8xf32>
    %12 = vector.shape_cast %11 : vector<2x1x8xf32> to vector<2x8xf32>
    %c0_11 = arith.constant 0 : index
    %c2 = arith.constant 2 : index
    %c0_12 = arith.constant 0 : index
    %13 = vector.load %arg1[%c0_11, %c2, %c0_12] : memref<16x5x8xf32, #tpu.memory_space<vmem>>, vector<16x1x8xf32>
    %14 = vector.shape_cast %13 : vector<16x1x8xf32> to vector<16x8xf32>
    %cst_13 = arith.constant dense<0.000000e+00> : vector<2x16xf32>
    %15 = tpu.matmul %12, %14, %cst_13 {dimension_numbers = #tpu.dot_dimension_numbers<[1], [1], [0], [0], [0, 0, 1, 0], [], []>} : vector<2x8xf32>, vector<16x8xf32>, vector<2x16xf32> -> vector<2x16xf32>
    %16 = arith.addf %10, %15 : vector<2x16xf32>
    %c0_14 = arith.constant 0 : index
    %c11 = arith.constant 11 : index
    %c0_15 = arith.constant 0 : index
    %17 = vector.load %arg0[%c0_14, %c11, %c0_15] : memref<2x16x8xf32, #tpu.memory_space<vmem>>, vector<2x1x8xf32>
    %18 = vector.shape_cast %17 : vector<2x1x8xf32> to vector<2x8xf32>
    %c0_16 = arith.constant 0 : index
    %c3 = arith.constant 3 : index
    %c0_17 = arith.constant 0 : index
    %19 = vector.load %arg1[%c0_16, %c3, %c0_17] : memref<16x5x8xf32, #tpu.memory_space<vmem>>, vector<16x1x8xf32>
    %20 = vector.shape_cast %19 : vector<16x1x8xf32> to vector<16x8xf32>
    %cst_18 = arith.constant dense<0.000000e+00> : vector<2x16xf32>
    %21 = tpu.matmul %18, %20, %cst_18 {dimension_numbers = #tpu.dot_dimension_numbers<[1], [1], [0], [0], [0, 0, 1, 0], [], []>} : vector<2x8xf32>, vector<16x8xf32>, vector<2x16xf32> -> vector<2x16xf32>
    %22 = arith.addf %16, %21 : vector<2x16xf32>
    %c0_19 = arith.constant 0 : index
    %c12 = arith.constant 12 : index
    %c0_20 = arith.constant 0 : index
    %23 = vector.load %arg0[%c0_19, %c12, %c0_20] : memref<2x16x8xf32, #tpu.memory_space<vmem>>, vector<2x1x8xf32>
    %24 = vector.shape_cast %23 : vector<2x1x8xf32> to vector<2x8xf32>
    %c0_21 = arith.constant 0 : index
    %c4 = arith.constant 4 : index
    %c0_22 = arith.constant 0 : index
    %25 = vector.load %arg1[%c0_21, %c4, %c0_22] : memref<16x5x8xf32, #tpu.memory_space<vmem>>, vector<16x1x8xf32>
    %26 = vector.shape_cast %25 : vector<16x1x8xf32> to vector<16x8xf32>
    %cst_23 = arith.constant dense<0.000000e+00> : vector<2x16xf32>
    %27 = tpu.matmul %24, %26, %cst_23 {dimension_numbers = #tpu.dot_dimension_numbers<[1], [1], [0], [0], [0, 0, 1, 0], [], []>} : vector<2x8xf32>, vector<16x8xf32>, vector<2x16xf32> -> vector<2x16xf32>
    %28 = arith.addf %22, %27 : vector<2x16xf32>
    %c0_24 = arith.constant 0 : index
    %c0_25 = arith.constant 0 : index
    %29 = vector.load %arg2[%c0_24, %c0_25] : memref<1x16xf32, #tpu.memory_space<vmem>>, vector<1x16xf32>
    %30 = vector.broadcast %29 : vector<1x16xf32> to vector<2x16xf32>
    %31 = arith.addf %28, %30 : vector<2x16xf32>
    %cst_26 = arith.constant 0.000000e+00 : f32
    %32 = vector.broadcast %cst_26 : f32 to vector<2x16xf32>
    %33 = arith.maximumf %31, %32 : vector<2x16xf32>
    %c0_27 = arith.constant 0 : index
    %c0_28 = arith.constant 0 : index
    %34 = vector.load %arg3[%c0_27, %c0_28] : memref<16x8xf32, #tpu.memory_space<vmem>>, vector<16x8xf32>
    %cst_29 = arith.constant dense<0.000000e+00> : vector<2x8xf32>
    %35 = tpu.matmul %33, %34, %cst_29 {dimension_numbers = #tpu.dot_dimension_numbers<[1], [0], [0], [1], [0, 0, 1, 1], [], []>} : vector<2x16xf32>, vector<16x8xf32>, vector<2x8xf32> -> vector<2x8xf32>
    %c0_30 = arith.constant 0 : index
    %c0_31 = arith.constant 0 : index
    %36 = vector.load %arg4[%c0_30, %c0_31] : memref<1x8xf32, #tpu.memory_space<vmem>>, vector<1x8xf32>
    %37 = vector.broadcast %36 : vector<1x8xf32> to vector<2x8xf32>
    %38 = arith.addf %35, %37 : vector<2x8xf32>
    %cst_32 = arith.constant 0.000000e+00 : f32
    %39 = vector.broadcast %cst_32 : f32 to vector<2x8xf32>
    %40 = arith.maximumf %38, %39 : vector<2x8xf32>
    %c0_33 = arith.constant 0 : index
    %c0_34 = arith.constant 0 : index
    %41 = vector.load %arg5[%c0_33, %c0_34] : memref<2x8xf32, #tpu.memory_space<vmem>>, vector<2x8xf32>
    tpu.vector_store %arg5[%c0_33, %c0_34], %40 {strides = array<i32>} : memref<2x8xf32, #tpu.memory_space<vmem>>, vector<2x8xf32>,
    return
  }
}

</mosaic_0001>

<bundles_post_ra>
// kernel: tpu_custom_call.1
= control target key start
LH: loop header
LB: loop body
LE: loop exit
PB: predicated region body
PF: predicated region fallthrough
CT: control target
= control target key end

     0   :  { %v980_v0 = vmov 0.0|0.0   ;;  %vm60_vm0 = vcmask 1041409   ;;  %vm81_vm1 = vcmask 1042434   ;;  %vm84_vm2 = vcmask 1043459   ;;  %s1425_s0 = inlined_call_operand.vmem [shape: f32[2,16,8], index: 0, kind: input, shape index: {}]   ;;  %s1426_s1 = inlined_call_operand.vmem [shape: f32[16,5,8], index: 1, kind: input, shape index: {}]   ;;  %s1427_s2 = inlined_call_operand.vmem [shape: f32[1,16], index: 2, kind: input, shape index: {}]   ;;  %s1428_s3 = inlined_call_operand.vmem [shape: f32[16,8], index: 3, kind: input, shape index: {}]   ;;  %s1429_s4 = inlined_call_operand.vmem [shape: f32[1,8], index: 4, kind: input, shape index: {}]   ;;  %s1430_s5 = inlined_call_operand.hbm [shape: f32[2,8], index: 5, kind: output, shape index: {}]  }
   0x1   :  { %929 = vmatprep.subr.bf16.mxu0 %v980_v0  ;;  %v42_v1 = vld [vmem:[%s1426_s1 + $0x9] sm:$0x1]  ;;  %933 = vmatprep.subr.bf16.mxu1 %v980_v0  ;;  %v41_v2 = vld [vmem:[%s1426_s1 + $0x1] sm:$0x1]  ;;  %v43_v3 = vld [vmem:[%s1426_s1 + $0x11] sm:$0x1] }
   0x2   :  { %v44_v4 = vld [vmem:[%s1426_s1 + $0x19] sm:$0x1]  ;;  %v45_v5 = vld [vmem:[%s1426_s1 + $0x21] sm:$0x1]  ;;  %v46_v6 = vld [vmem:[%s1426_s1 + $0x29] sm:$0x1] }
   0x3   :  { %v47_v7 = vld [vmem:[%s1426_s1 + $0x31] sm:$0x1]  ;;  %v48_v8 = vld [vmem:[%s1426_s1 + $0x39] sm:$0x1]  ;;  %v50_v9 = vld [vmem:[%s1426_s1 + $0x49] sm:$0x1] }
   0x4   :  { %v51_v10 = vld [vmem:[%s1426_s1 + $0x51] sm:$0x1]  ;;  %v52_v11 = vld [vmem:[%s1426_s1 + $0x59] sm:$0x1]  ;;  %v53_v12 = vld [vmem:[%s1426_s1 + $0x61] sm:$0x1] }
   0x5   :  { %v78_v13 = vrot.slane %v42_v1, 7  ;;  %v80_v14 = vrot.slane %v43_v3, 6  ;;  %v49_v15 = vld [vmem:[%s1426_s1 + $0x41] sm:$0x1]  ;;  %v54_v16 = vld [vmem:[%s1426_s1 + $0x69] sm:$0x1] }
   0x6   :  { %v83_v17 = vrot.slane %v44_v4, 5  ;;  %v86_v18 = vrot.slane %v45_v5, 4  ;;  %v55_v19 = vld [vmem:[%s1426_s1 + $0x71] sm:$0x1]  ;;  %v56_v20 = vld [vmem:[%s1426_s1 + $0x79] sm:$0x1] }
   0x7   :  { %v79_v21 = vsel %vm60_vm0, %v78_v13, %v41_v2  ;;  %vm87_vm3 = vcmask 1044484   ;;  %v89_v22 = vrot.slane %v46_v6, 3  ;;  %vm90_vm4 = vcmask 1045509   ;;  %v24_v25 = vld [vmem:[%s1426_s1 + $0x8] sm:$0x1] }
   0x8   :  { %v82_v23 = vsel %vm81_vm1, %v80_v14, %v79_v21  ;;  %v92_v24 = vrot.slane %v47_v7, 2  ;;  %vm93_vm5 = vcmask 1046534   ;;  %v95_v27 = vrot.slane %v48_v8, 1  ;;  %v25_v30 = vld [vmem:[%s1426_s1 + $0x10] sm:$0x1] }
   0x9   :  { %v85_v26 = vsel %vm84_vm2, %v83_v17, %v82_v23  ;;  %v98_v28 = vrot.slane %v50_v9, 7  ;;  %v100_v29 = vrot.slane %v51_v10, 6  ;;  %vm96_vm6 = vcmask 1047559   ;;  %v26_v34 = vld [vmem:[%s1426_s1 + $0x18] sm:$0x1] }
   0xa   :  { %v88_v31 = vsel %vm87_vm3, %v86_v18, %v85_v26  ;;  %v102_v32 = vrot.slane %v52_v11, 5  ;;  %v104_v33 = vrot.slane %v53_v12, 4  ;;  %v106_v37 = vrot.slane %v54_v16, 3  ;;  %v23_v39 = vld [vmem:[%s1426_s1] sm:$0x1] }
   0xb   :  { %v91_v35 = vsel %vm90_vm4, %v89_v22, %v88_v31  ;;  %v99_v36 = vsel %vm60_vm0, %v98_v28, %v49_v15  ;;  %v108_v38 = vrot.slane %v55_v19, 2  ;;  %v110_v42 = vrot.slane %v56_v20, 1  ;;  %v27_v43 = vld [vmem:[%s1426_s1 + $0x20] sm:$0x1]  ;;  %v28_v44 = vld [vmem:[%s1426_s1 + $0x28] sm:$0x1] }
   0xc   :  { %v94_v40 = vsel %vm93_vm5, %v92_v24, %v91_v35  ;;  %v101_v41 = vsel %vm81_vm1, %v100_v29, %v99_v36  ;;  %v209_v45 = vrot.slane %v24_v25, 7  ;;  %vm112_vm7 = vcmask 64512   ;;  %v29_v47 = vld [vmem:[%s1426_s1 + $0x30] sm:$0x1]  ;;  %v30_v52 = vld [vmem:[%s1426_s1 + $0x38] sm:$0x1] }
   0xd   :  { %v103_v46 = vsel %vm84_vm2, %v102_v32, %v101_v41  ;;  %v211_v48 = vrot.slane %v25_v30, 6  ;;  %v213_v49 = vrot.slane %v26_v34, 5  ;;  %v97_v50 = vsel %vm96_vm6, %v95_v27, %v94_v40  ;;  %v32_v53 = vld [vmem:[%s1426_s1 + $0x48] sm:$0x1]  ;;  %v33_v54 = vld [vmem:[%s1426_s1 + $0x50] sm:$0x1]  ;;  %vm1125_vm8 = vmpackc.low %vm112_vm7, %vm112_vm7 }
   0xe   :  { %v105_v51 = vsel %vm87_vm3, %v104_v33, %v103_v46  ;;  %v210_v55 = vsel %vm60_vm0, %v209_v45, %v23_v39  ;;  %v34_v57 = vld [vmem:[%s1426_s1 + $0x58] sm:$0x1]  ;;  %v35_v58 = vld [vmem:[%s1426_s1 + $0x60] sm:$0x1]  ;;  %v215_v60 = vrot.slane %v27_v43, 4  ;;  %v217_v61 = vrot.slane %v28_v44, 3 }
   0xf   :  { %v107_v56 = vsel %vm90_vm4, %v106_v37, %v105_v51  ;;  %v212_v59 = vsel %vm81_vm1, %v211_v48, %v210_v55  ;;  %v31_v63 = vld [vmem:[%s1426_s1 + $0x40] sm:$0x1]  ;;  %v36_v1 = vld [vmem:[%s1426_s1 + $0x68] sm:$0x1]  ;;  %v219_v3 = vrot.slane %v29_v47, 2  ;;  %v223_v8 = vrot.slane %v32_v53, 7 }
  0x10   :  { %v109_v62 = vsel %vm93_vm5, %v108_v38, %v107_v56  ;;  %v214_v2 = vsel %vm84_vm2, %v213_v49, %v212_v59  ;;  %v37_v6 = vld [vmem:[%s1426_s1 + $0x70] sm:$0x1]  ;;  %v225_v9 = vrot.slane %v33_v54, 6  ;;  %v38_v11 = vld [vmem:[%s1426_s1 + $0x78] sm:$0x1]  ;;  %v227_v13 = vrot.slane %v34_v57, 5 }
  0x11   :  { %v111_v4 = vsel %vm96_vm6, %v110_v42, %v109_v62  ;;  %v216_v7 = vsel %vm87_vm3, %v215_v60, %v214_v2  ;;  %v229_v14 = vrot.slane %v35_v58, 4  ;;  %v40_v15 = vld [vmem:[%s1425_s0 + $0x19] sm:$0x1]  ;;  %v221_v16 = vrot.slane %v30_v52, 1  ;;  %v39_v22 = vld [vmem:[%s1425_s0 + $0x9] sm:$0x1] }
  0x12   :  { %v930_v10 = vpack.c.bf16 %v111_v4, %v97_v50  ;;  %v218_v12 = vsel %vm90_vm4, %v217_v61, %v216_v7  ;;  %v224_v17 = vsel %vm60_vm0, %v223_v8, %v31_v63  ;;  %v231_v18 = vrot.slane %v36_v1, 3  ;;  %v1153_v26 = vld [vmem:[%s1425_s0 + $0x18] sm:$0x1]  ;;  %v315_v29 = vld [vmem:[%s1426_s1 + $0x2] sm:$0x1] }
  0x13   :  { %v220_v19 = vsel %vm93_vm5, %v219_v3, %v218_v12  ;;  %v226_v20 = vsel %vm81_vm1, %v225_v9, %v224_v17  ;;  %v233_v21 = vrot.slane %v37_v6, 2  ;;  %v235_v24 = vrot.slane %v38_v11, 1  ;;  %v316_v30 = vld [vmem:[%s1426_s1 + $0xa] sm:$0x1]  ;;  %v317_v31 = vld [vmem:[%s1426_s1 + $0x12] sm:$0x1] }
  0x14   :  { %932 = vmatpush3.bf16.xpose.msk.msra.mxu0 %vm1125_vm8, %v930_v10  ;;  %v228_v23 = vsel %vm84_vm2, %v227_v13, %v226_v20  ;;  %v59_v25 = vrot.slane %v40_v15, 7  ;;  %vm981_vm9 = vmmov 0   ;;  %v982_v28 = vmov 0.0   ;;  %v318_v32 = vld [vmem:[%s1426_s1 + $0x1a] sm:$0x1] }
  0x15   :  { %937 = vmatprep.subr.bf16.mxu0 %v980_v0  ;;  %v230_v27 = vsel %vm87_vm3, %v229_v14, %v228_v23  ;;  %891 = vmatprep.mubr.msk.f32.mxu0 %vm981_vm9, %v982_v28  ;;  %v222_v33 = vsel %vm96_vm6, %v221_v16, %v220_v19  ;;  %v319_v35 = vld [vmem:[%s1426_s1 + $0x22] sm:$0x1]  ;;  %v320_v36 = vld [vmem:[%s1426_s1 + $0x2a] sm:$0x1]  ;;  %v321_v37 = vld [vmem:[%s1426_s1 + $0x32] sm:$0x1] }
  0x16   :  { %898 = vmatprep.mubr.msk.f32.mxu1 %vm981_vm9, %v982_v28  ;;  %v232_v34 = vsel %vm90_vm4, %v231_v18, %v230_v27  ;;  %v61_v39 = vsel %vm60_vm0, %v59_v25, %v39_v22  ;;  %v322_v40 = vld [vmem:[%s1426_s1 + $0x3a] sm:$0x1]  ;;  %v324_v41 = vld [vmem:[%s1426_s1 + $0x4a] sm:$0x1]  ;;  %v325_v42 = vld [vmem:[%s1426_s1 + $0x52] sm:$0x1] }
  0x17   :  { %v234_v38 = vsel %vm93_vm5, %v233_v21, %v232_v34  ;;  %v326_v43 = vld [vmem:[%s1426_s1 + $0x5a] sm:$0x1]  ;;  %v327_v45 = vld [vmem:[%s1426_s1 + $0x62] sm:$0x1]  ;;  %v351_v46 = vrot.slane %v316_v30, 7  ;;  %v353_v47 = vrot.slane %v317_v31, 6 }
  0x18   :  { %v236_v44 = vsel %vm96_vm6, %v235_v24, %v234_v38  ;;  %v355_v48 = vrot.slane %v318_v32, 5  ;;  %v191_v50 = vrot.slane %v1153_v26, 7  ;;  %v323_v51 = vld [vmem:[%s1426_s1 + $0x42] sm:$0x1]  ;;  %v328_v52 = vld [vmem:[%s1426_s1 + $0x6a] sm:$0x1] }
  0x19   :  { %v934_v49 = vpack.c.bf16 %v236_v44, %v222_v33  ;;  %v357_v53 = vrot.slane %v319_v35, 4  ;;  %v329_v54 = vld [vmem:[%s1426_s1 + $0x72] sm:$0x1]  ;;  %v352_v55 = vsel %vm60_vm0, %v351_v46, %v315_v29  ;;  %v359_v56 = vrot.slane %v320_v36, 3  ;;  %v330_v59 = vld [vmem:[%s1426_s1 + $0x7a] sm:$0x1] }
  0x1a   :  { %v365_v57 = vrot.slane %v324_v41, 7  ;;  %v367_v58 = vrot.slane %v325_v42, 6  ;;  %v354_v60 = vsel %vm81_vm1, %v353_v47, %v352_v55  ;;  %v361_v61 = vrot.slane %v321_v37, 2  ;;  %v21_v1 = vld [vmem:[%s1425_s0 + $0x8] sm:$0x1] }
  0x1b   :  { %892 = vmatmul.mubr.msk.f32.vlgmr.msra.gmra.mrb[0].mxu0 %vm112_vm7, %v61_v39  ;;  %936 = vmatpush3.bf16.xpose.msk.msra.mxu1 %vm1125_vm8, %v934_v49  ;;  %v369_v62 = vrot.slane %v326_v43, 5  ;;  %v371_v63 = vrot.slane %v327_v45, 4  ;;  %v356_v2 = vsel %vm84_vm2, %v355_v48, %v354_v60  ;;  %v363_v3 = vrot.slane %v322_v40, 1  ;;  %v459_v7 = vld [vmem:[%s1426_s1 + $0xb] sm:$0x1] }
  0x1c   :  { %905 = vmatprep.mubr.msk.f32.mxu0 %vm981_vm9, %v982_v28  ;;  %v366_v4 = vsel %vm60_vm0, %v365_v57, %v323_v51  ;;  %v373_v6 = vrot.slane %v328_v52, 3  ;;  %941 = vmatprep.subr.bf16.mxu1 %v980_v0  ;;  %v358_v8 = vsel %vm87_vm3, %v357_v53, %v356_v2  ;;  %v375_v10 = vrot.slane %v329_v54, 2  ;;  %v458_v11 = vld [vmem:[%s1426_s1 + $0x3] sm:$0x1]  ;;  %v460_v12 = vld [vmem:[%s1426_s1 + $0x13] sm:$0x1] }
  0x1d   :  { %v368_v9 = vsel %vm81_vm1, %v367_v58, %v366_v4  ;;  %v461_v13 = vld [vmem:[%s1426_s1 + $0x1b] sm:$0x1]  ;;  %v360_v14 = vsel %vm90_vm4, %v359_v56, %v358_v8  ;;  %v377_v16 = vrot.slane %v330_v59, 1  ;;  %v462_v17 = vld [vmem:[%s1426_s1 + $0x23] sm:$0x1]  ;;  %v192_v19 = vsel %vm60_vm0, %v191_v50, %v21_v1 }
  0x1e   :  { %v370_v15 = vsel %vm84_vm2, %v369_v62, %v368_v9  ;;  %v463_v18 = vld [vmem:[%s1426_s1 + $0x2b] sm:$0x1]  ;;  %v362_v20 = vsel %vm93_vm5, %v361_v61, %v360_v14  ;;  %v464_v22 = vld [vmem:[%s1426_s1 + $0x33] sm:$0x1]  ;;  %v465_v23 = vld [vmem:[%s1426_s1 + $0x3b] sm:$0x1] }
  0x1f   :  { %v372_v21 = vsel %vm87_vm3, %v371_v63, %v370_v15  ;;  %v467_v24 = vld [vmem:[%s1426_s1 + $0x4b] sm:$0x1]  ;;  %v364_v25 = vsel %vm96_vm6, %v363_v3, %v362_v20  ;;  %v466_v27 = vld [vmem:[%s1426_s1 + $0x43] sm:$0x1]  ;;  %v468_v29 = vld [vmem:[%s1426_s1 + $0x53] sm:$0x1] }
  0x20   :  { %v374_v26 = vsel %vm90_vm4, %v373_v6, %v372_v21  ;;  %v469_v30 = vld [vmem:[%s1426_s1 + $0x5b] sm:$0x1]  ;;  %v494_v31 = vrot.slane %v459_v7, 7  ;;  %v496_v32 = vrot.slane %v460_v12, 6  ;;  %v470_v34 = vld [vmem:[%s1426_s1 + $0x63] sm:$0x1] }
  0x21   :  { %v376_v33 = vsel %vm93_vm5, %v375_v10, %v374_v26  ;;  %v471_v35 = vld [vmem:[%s1426_s1 + $0x6b] sm:$0x1]  ;;  %v498_v36 = vrot.slane %v461_v13, 5  ;;  %v500_v37 = vrot.slane %v462_v17, 4  ;;  %v472_v39 = vld [vmem:[%s1426_s1 + $0x73] sm:$0x1] }
  0x22   :  { %899 = vmatmul.mubr.msk.f32.vlgmr.msra.gmra.mrb[0].mxu1 %vm112_vm7, %v192_v19  ;;  %v378_v38 = vsel %vm96_vm6, %v377_v16, %v376_v33  ;;  %v473_v40 = vld [vmem:[%s1426_s1 + $0x7b] sm:$0x1]  ;;  %v495_v41 = vsel %vm60_vm0, %v494_v31, %v458_v11  ;;  %v502_v42 = vrot.slane %v463_v18, 3  ;;  %v504_v43 = vrot.slane %v464_v22, 2  ;;  %v314_v48 = vld [vmem:[%s1425_s0 + $0x1a] sm:$0x1] }
  0x23   :  { %v938_v44 = vpack.c.bf16 %v378_v38, %v364_v25  ;;  %v497_v45 = vsel %vm81_vm1, %v496_v32, %v495_v41  ;;  %v508_v46 = vrot.slane %v467_v24, 7  ;;  %v510_v47 = vrot.slane %v468_v29, 6  ;;  %912 = vmatprep.mubr.msk.f32.mxu1 %vm981_vm9, %v982_v28  ;;  %v602_v49 = vld [vmem:[%s1426_s1 + $0xc] sm:$0x1]  ;;  %v313_v54 = vld [vmem:[%s1425_s0 + $0xa] sm:$0x1] }
  0x24   :  { %v499_v50 = vsel %vm84_vm2, %v498_v36, %v497_v45  ;;  %v506_v51 = vrot.slane %v465_v23, 1  ;;  %v512_v52 = vrot.slane %v469_v30, 5  ;;  %v514_v53 = vrot.slane %v470_v34, 4  ;;  %v601_v59 = vld [vmem:[%s1426_s1 + $0x4] sm:$0x1] }
  0x25   :  { %940 = vmatpush3.bf16.xpose.msk.msra.mxu0 %vm1125_vm8, %v938_v44  ;;  %v501_v55 = vsel %vm87_vm3, %v500_v37, %v499_v50  ;;  %v509_v56 = vsel %vm60_vm0, %v508_v46, %v466_v27  ;;  %v516_v57 = vrot.slane %v471_v35, 3  ;;  %v518_v58 = vrot.slane %v472_v39, 2  ;;  %v603_v60 = vld [vmem:[%s1426_s1 + $0x14] sm:$0x1]  ;;  %v604_v1 = vld [vmem:[%s1426_s1 + $0x1c] sm:$0x1] }
  0x26   :  { %v503_v61 = vsel %vm90_vm4, %v502_v42, %v501_v55  ;;  %v511_v62 = vsel %vm81_vm1, %v510_v47, %v509_v56  ;;  %v333_v63 = vrot.slane %v314_v48, 7  ;;  %945 = vmatprep.subr.bf16.mxu0 %v980_v0  ;;  %v605_v2 = vld [vmem:[%s1426_s1 + $0x24] sm:$0x1]  ;;  %v637_v3 = vrot.slane %v602_v49, 7  ;;  %v606_v8 = vld [vmem:[%s1426_s1 + $0x2c] sm:$0x1] }
  0x27   :  { %v505_v4 = vsel %vm93_vm5, %v504_v43, %v503_v61  ;;  %v513_v6 = vsel %vm84_vm2, %v512_v52, %v511_v62  ;;  %v520_v7 = vrot.slane %v473_v40, 1  ;;  %v607_v9 = vld [vmem:[%s1426_s1 + $0x34] sm:$0x1]  ;;  %v608_v13 = vld [vmem:[%s1426_s1 + $0x3c] sm:$0x1]  ;;  %v639_v20 = vrot.slane %v603_v60, 6 }
  0x28   :  { %v507_v10 = vsel %vm96_vm6, %v506_v51, %v505_v4  ;;  %v515_v11 = vsel %vm87_vm3, %v514_v53, %v513_v6  ;;  %v334_v12 = vsel %vm60_vm0, %v333_v63, %v313_v54  ;;  %v610_v14 = vld [vmem:[%s1426_s1 + $0x4c] sm:$0x1]  ;;  %v611_v15 = vld [vmem:[%s1426_s1 + $0x54] sm:$0x1]  ;;  %v612_v16 = vld [vmem:[%s1426_s1 + $0x5c] sm:$0x1]  ;;  %v638_v17 = vsel %vm60_vm0, %v637_v3, %v601_v59 }
  0x29   :  { %v517_v18 = vsel %vm90_vm4, %v516_v57, %v515_v11  ;;  %v613_v19 = vld [vmem:[%s1426_s1 + $0x64] sm:$0x1]  ;;  %v641_v21 = vrot.slane %v604_v1, 5  ;;  %v643_v22 = vrot.slane %v605_v2, 4  ;;  %v614_v25 = vld [vmem:[%s1426_s1 + $0x6c] sm:$0x1]  ;;  %v640_v31 = vsel %vm81_vm1, %v639_v20, %v638_v17 }
  0x2a   :  { %v519_v23 = vsel %vm93_vm5, %v518_v58, %v517_v18  ;;  %v609_v24 = vld [vmem:[%s1426_s1 + $0x44] sm:$0x1]  ;;  %v645_v26 = vrot.slane %v606_v8, 3  ;;  %v647_v27 = vrot.slane %v607_v9, 2  ;;  %v615_v30 = vld [vmem:[%s1426_s1 + $0x74] sm:$0x1] }
  0x2b   :  { %v521_v29 = vsel %vm96_vm6, %v520_v7, %v519_v23  ;;  %v651_v32 = vrot.slane %v610_v14, 7  ;;  %v653_v33 = vrot.slane %v611_v15, 6  ;;  %v457_v34 = vld [vmem:[%s1425_s0 + $0x1b] sm:$0x1]  ;;  %v616_v36 = vld [vmem:[%s1426_s1 + $0x7c] sm:$0x1]  ;;  %v642_v37 = vsel %vm84_vm2, %v641_v21, %v640_v31 }
  0x2c   :  { %v942_v35 = vpack.c.bf16 %v521_v29, %v507_v10  ;;  %906 = vmatmul.mubr.msk.f32.vlgmr.msra.gmra.mrb[2].mxu0 %vm112_vm7, %v334_v12  ;;  %v655_v38 = vrot.slane %v612_v16, 5  ;;  %v657_v39 = vrot.slane %v613_v19, 4 }
  0x2d   :  { %10 = vsyncpa [#allocation3], 0  ;;  %v644_v40 = vsel %vm87_vm3, %v643_v22, %v642_v37  ;;  %v649_v41 = vrot.slane %v608_v13, 1  ;;  %v652_v42 = vsel %vm60_vm0, %v651_v32, %v609_v24  ;;  %v659_v43 = vrot.slane %v614_v25, 3  ;;  %919 = vmatprep.mubr.msk.f32.mxu0 %vm981_vm9, %v982_v28  ;;  %v456_v51 = vld [vmem:[%s1425_s0 + $0xb] sm:$0x1] }
  0x2e   :  { %944 = vmatpush3.bf16.xpose.msk.msra.mxu1 %vm1125_vm8, %v942_v35  ;;  %v646_v44 = vsel %vm90_vm4, %v645_v26, %v644_v40  ;;  %v654_v45 = vsel %vm81_vm1, %v653_v33, %v652_v42  ;;  %v661_v46 = vrot.slane %v615_v30, 2  ;;  %v476_v47 = vrot.slane %v457_v34, 7  ;;  %v600_v58 = vld [vmem:[%s1425_s0 + $0x1c] sm:$0x1]  ;;  %v599_v60 = vld [vmem:[%s1425_s0 + $0xc] sm:$0x1] }
  0x2f   :  { %v648_v48 = vsel %vm93_vm5, %v647_v27, %v646_v44  ;;  %v656_v49 = vsel %vm84_vm2, %v655_v38, %v654_v45  ;;  %v663_v50 = vrot.slane %v616_v36, 1  ;;  %949 = vmatprep.subr.bf16.mxu1 %v980_v0  ;;  %v619_v0 = vrot.slane %v600_v58, 7  ;;  %v751_v62 = vld [vmem:[%s1428_s3] sm:$0xff]  ;;  %v752_v5 = vld [vmem:[%s1428_s3 + $0x8] sm:$0xff]  ;;  %s983_s28 = smov [#allocation2]  }
  0x30   :  { %v658_v52 = vsel %vm87_vm3, %v657_v39, %v656_v49  ;;  %v650_v53 = vsel %vm96_vm6, %v649_v41, %v648_v48  ;;  %v477_v56 = vsel %vm60_vm0, %v476_v47, %v456_v51  ;;  %v950_v63 = vpack.c.bf16 %v752_v5, %v751_v62  ;;  %v866_v13 = vld [vmem:[%s1427_s2] ss:$0 sm:$0xff]  ;;  %s843_s29 = sshll.u32 %s983_s28, 4  ;;  %s844_s29 = int_to_ptr.vmem [resolvable:$true] %s843_s29 }
  0x31   :  { %v660_v54 = vsel %vm90_vm4, %v659_v43, %v658_v52  ;;  %v620_v61 = vsel %vm60_vm0, %v619_v0, %v599_v60  ;;  %vm760_vm10 = vcmask 130048   ;;  %v867_v18 = vld [vmem:[%s1429_s4] ss:$0 sm:$0xff]  ;;  %vm835_vm11 = vcmask 58368   ;;  %s956_s2 = scalar_lea.vmem %s844_s29, 32  ;;  %p961_p1 = scmp.lt.s32.totalorder %s844_s29, %s844_s29 }
  0x32   :  { %v662_v55 = vsel %vm93_vm5, %v661_v46, %v660_v54  ;;  %p957_p0 = scmp.ne.s32.totalorder %s844_s29, %s956_s2  ;;  %p962_p2 = scmp.lt.s32.totalorder %s956_s2, %s956_s2 }
  0x33   :  { %v664_v57 = vsel %vm96_vm6, %v663_v50, %v662_v55 }
  0x34   :  { %v946_v59 = vpack.c.bf16 %v664_v57, %v650_v53  ;;  %p963_p3 = por %p962_p2, %p961_p1 }
  0x35   :  { %913 = vmatmul.mubr.msk.f32.vlgmr.msra.gmra.mrb[2].mxu1 %vm112_vm7, %v477_v56 }
  0x36   :  { %948 = vmatpush3.bf16.xpose.msk.msra.mxu0 %vm1125_vm8, %v946_v59  ;;  %926 = vmatprep.mubr.msk.f32.mxu1 %vm981_vm9, %v982_v28  ;;  %p964_p4 = pnand %p963_p3, %p957_p0 }
  0x37   :  { %951 = vmatpush3.bf16.msra.mxu1 %v950_v63 }
  0x3d   :  { %920 = vmatmul.mubr.msk.f32.vlgmr.msra.gmra.mrb[4].mxu0 %vm112_vm7, %v620_v61 }
  0xee   :  { %v185_v1 = vpop.f32.mrb[0].mxu0 }
  0xef   :  { %v893_v28 = vpop.f32.mrb[1].mxu0 }
  0xf5   :  { %v309_v2 = vpop.f32.mrb[0].mxu1 }
  0xf6   :  { %v310_v3 = vadd.f32 %v309_v2, %v185_v1  ;;  %v900_v4 = vpop.f32.mrb[1].mxu1 }
  0xff   :  { %v451_v6 = vpop.f32.mrb[2].mxu0 }
 0x100   :  { %v455_v7 = vadd.f32 %v451_v6, %v310_v3  ;;  %v907_v8 = vpop.f32.mrb[3].mxu0 }
 0x108   :  { %v594_v9 = vpop.f32.mrb[2].mxu1 }
 0x109   :  { %v598_v10 = vadd.f32 %v594_v9, %v455_v7  ;;  %v914_v11 = vpop.f32.mrb[3].mxu1 }
 0x110   :  { %v737_v12 = vpop.f32.mrb[4].mxu0 }
 0x111   :  { %v741_v14 = vadd.f32 %v737_v12, %v598_v10  ;;  %v921_v15 = vpop.f32.mrb[5].mxu0 }
 0x113   :  { %v749_v16 = vadd.f32 %v866_v13, %v741_v14 }
 0x115   :  { %v750_v17 = vmax.f32 %v749_v16, 0.0 }
 0x117   :  { %927 = vmatmul.mubr.msk.f32.vlgmr.msra.gmra.mrb[4].mxu1 %vm760_vm10, %v750_v17 }
 0x1ea   :  { %v830_v19 = vpop.f32.mrb[4].mxu1 }
 0x1eb   :  { %v831_v20 = vadd.f32 %v867_v18, %v830_v19  ;;  %v928_v21 = vpop.f32.mrb[5].mxu1 }
 0x1ed   :  { %v834_v22 = vmax.f32 %v831_v20, 0.0 }
 0x1ef   :  { %836 = vst.msk [vmem:[#allocation2] sm:$0x3] %vm835_vm11, %v834_v22 }
 0x1f0   :  { %967 = shalt.err (!%p964_p4)
}
 0x1f1   :  { %s968_s4 = scalar_lea.hbm %s1430_s5, 32 }
 0x1f2   :  { %p969_p5 = scmp.ne.s32.totalorder %s1430_s5, %s968_s4  ;;  %p972_p6 = scmp.lt.u32.totalorder %s968_s4, %s1430_s5 }
 0x1f4   :  { %p974_p7 = pnand %p972_p6, %p969_p5 }
 0x1f6   :  { %977 = shalt.err (!%p974_p7)
}
 0x1f7   :  { %846 = dma.vmem_to_hbm [thread:$0]  %s844_s29, 32, %s1430_s5, [#allocation3]  }
 0x1f8   :  { %978 = dma.done.wait [#allocation3], 32  }
 0x1f9   :  { %979 = vsyncadd [#allocation3], 4294967264 }
 0x1fa   :  { %850 = vsyncpa [#allocation3], 1 }

</bundles_post_ra>
